<compile_context>
chip_gen: v7x
topology: tpu7x:2x2x1
jax: 0.10.0
libtpu: 0.0.40
codegen_flags: <defaults>
</compile_context>

<pallas_src>
import functools

import jax
import jax.numpy as jnp
from jax import lax
from jax.experimental import pallas as pl
from jax.experimental.pallas import tpu as pltpu

_TK_MAX = 32768   # max lanes per D tile (multiple of 128)
_TN_MAX = 128     # max rows per N tile (multiple of 8)

_BUDGET_CACHE = None


def _vmem_budget():
    """Returns (input_tile_budget_bytes, vmem_limit_bytes), generation-aware.

    input_tile_budget is the byte budget for ONE (single-buffer) step's worth
    of BOTH input tiles; double-buffering doubles the real footprint.
    """
    global _BUDGET_CACHE
    if _BUDGET_CACHE is not None:
        return _BUDGET_CACHE
    cap = None
    try:
        cap = int(pltpu.get_tpu_info().vmem_capacity_bytes)
    except Exception:
        cap = None
    if cap is None or cap <= 96 * 1024 * 1024:
        # v7x-class TensorCore (64 MiB VMEM) or unknown: stay conservative.
        # 16 MiB/step -> 32 MiB double-buffered inputs, well under 48 MiB limit.
        budget = (16 * 1024 * 1024, 48 * 1024 * 1024)
    else:
        # v5e / v6e (128 MiB VMEM): go bigger.
        budget = (24 * 1024 * 1024, 96 * 1024 * 1024)
    _BUDGET_CACHE = budget
    return budget


def _accum_rows(pred_ref, target_ref, a_ref, bc_ref, row_start, rows,
                chunk_offsets, tail):
    """Accumulate a += p*t and bc += p*p + t*t for `rows` rows starting at
    `row_start` (dynamic sublane offset), over static 128-lane chunk offsets
    plus an optional masked tail chunk, into the (tn, 128) scratch refs."""
    rsl = pl.ds(row_start, rows)
    a = a_ref[rsl, :]
    bc = bc_ref[rsl, :]
    for lo in chunk_offsets:                       # static, lane-aligned slices
        p = pred_ref[rsl, lo:lo + 128].astype(jnp.float32)
        t = target_ref[rsl, lo:lo + 128].astype(jnp.float32)
        a = a + p * t
        bc = bc + p * p + t * t
    if tail is not None:                           # single straddling chunk
        lo, rem = tail
        lane = lax.broadcasted_iota(jnp.int32, (rows, 128), 1)
        valid = lane < rem
        p = jnp.where(valid, pred_ref[rsl, lo:lo + 128].astype(jnp.float32), 0.0)
        t = jnp.where(valid, target_ref[rsl, lo:lo + 128].astype(jnp.float32), 0.0)
        a = a + p * t
        bc = bc + p * p + t * t
    a_ref[rsl, :] = a
    bc_ref[rsl, :] = bc


def _dice_kernel(pred_ref, target_ref, out_ref, a_ref, bc_ref, *, d, tk, tn):
    """Per-sample dice loss, tiled over (N-block, D-block).

    pred_ref/target_ref: (tn, tk) tile of the flattened (N, D) inputs, native dtype.
    out_ref:             (tn, 1) per-sample loss, written on the last D step.
    a_ref / bc_ref:      (tn, 128) f32 lane-dense accumulators for
                         sum(p*t) and sum(p*p + t*t).
    """
    k = pl.program_id(1)                 # D (reduction) axis, innermost
    nk = pl.num_programs(1)

    @pl.when(k == 0)
    def _():
        a_ref[...] = jnp.zeros_like(a_ref)
        bc_ref[...] = jnp.zeros_like(bc_ref)

    def run(chunk_offsets, tail):
        if tn <= 8:
            _accum_rows(pred_ref, target_ref, a_ref, bc_ref, 0, tn,
                        chunk_offsets, tail)
        else:
            # Loop over 8-row sublane groups: keeps code size independent of tn
            # while only ever using dynamic slices on the sublane dimension.
            def body(g, carry):
                _accum_rows(pred_ref, target_ref, a_ref, bc_ref,
                            pl.multiple_of(g * 8, 8), 8, chunk_offsets, tail)
                return carry
            lax.fori_loop(0, tn // 8, body, 0)

    full_offsets = tuple(range(0, tk, 128))
    last_valid = d - (pl.cdiv(d, tk) - 1) * tk     # valid elems in last D tile

    if last_valid == tk:
        # D divides evenly into tiles: unmasked path on every step.
        run(full_offsets, None)
    else:
        # Fast unmasked path for all but the last D step.
        @pl.when(k < nk - 1)
        def _():
            run(full_offsets, None)

        # Masked epilogue: only the valid chunks of the ragged last tile; a lane
        # mask is applied only to the single straddling chunk, and chunks that
        # are entirely out of range are never loaded.
        n_full = last_valid // 128
        rem = last_valid % 128
        tail = (n_full * 128, rem) if rem else None

        @pl.when(k == nk - 1)
        def _():
            run(full_offsets[:n_full], tail)

    @pl.when(k == nk - 1)
    def _():
        a = jnp.sum(a_ref[...], axis=1, keepdims=True)
        bc = jnp.sum(bc_ref[...], axis=1, keepdims=True) + 0.002  # (b+.001)+(c+.001)
        out_ref[...] = 1.0 - 2.0 * a / bc


@jax.jit
def _dice_loss_per_sample(pred2d, target2d):
    """pred2d/target2d: (N, D), any float dtype. Returns per-sample loss (N,) f32."""
    n, d = pred2d.shape
    sum_itemsize = pred2d.dtype.itemsize + target2d.dtype.itemsize
    tile_budget, vmem_limit = _vmem_budget()

    # D tile: as large as reasonable (pure HBM-bandwidth workload), mult of 128.
    d_pad = 128 * pl.cdiv(d, 128)
    tk = min(_TK_MAX, d_pad)

    # N tile: whole batch if it fits 8 sublanes; otherwise a multiple of 8 sized
    # up toward the per-step byte budget, but kept small enough that the
    # "parallel" N axis has >= 2 blocks whenever n >= 16 (v7x megacore).
    if n <= 8:
        tn = n
    else:
        tn_budget = max(8, ((tile_budget // (tk * sum_itemsize)) // 8) * 8)
        tn = min(_TN_MAX, tn_budget, 8 * (n // 8))
        if n >= 16:
            tn = min(tn, max(8, ((n // 2) // 8) * 8))

    grid = (pl.cdiv(n, tn), pl.cdiv(d, tk))
    kernel = functools.partial(_dice_kernel, d=d, tk=tk, tn=tn)

    out = pl.pallas_call(
        kernel,
        out_shape=jax.ShapeDtypeStruct((n, 1), jnp.float32),
        grid_spec=pltpu.PrefetchScalarGridSpec(
            num_scalar_prefetch=0,
            grid=grid,
            in_specs=[
                pl.BlockSpec((tn, tk), lambda i, k: (i, k)),
                pl.BlockSpec((tn, tk), lambda i, k: (i, k)),
            ],
            out_specs=pl.BlockSpec((tn, 1), lambda i, k: (i, 0)),
            scratch_shapes=[
                pltpu.VMEM((tn, 128), jnp.float32),   # sum(p*t)
                pltpu.VMEM((tn, 128), jnp.float32),   # sum(p*p + t*t)
            ],
        ),
        compiler_params=pltpu.CompilerParams(
            dimension_semantics=("parallel", "arbitrary"),  # N parallel, D reduction
            vmem_limit_bytes=vmem_limit,
        ),
    )(pred2d, target2d)
    return out[:, 0]


class DiceLoss:
    """JAX/Pallas port of mmdet DiceLoss (forward pass only)."""

    def __init__(self, reduction="mean", loss_weight=1.0, class_weight=None):
        self.reduction = reduction
        self.loss_weight = loss_weight
        self.class_weight = class_weight
        # NOTE: in the reference forward(), class_weight is computed but never
        # passed into dice_loss (weight=None), so it has no effect on the output.
        # TODO(synk): class_weight/inds are intentionally unused, matching the spec.

    def __call__(self, pred, target, inds=None, avg_factor=None):
        n = pred.shape[0]
        # Plain reshape only (free view in XLA); native dtypes streamed to the
        # kernel and cast to f32 there (no extra HBM pass).
        pred2d = jnp.reshape(pred, (n, -1))
        target2d = jnp.reshape(target, (n, -1))

        loss = _dice_loss_per_sample(pred2d, target2d)  # (N,) f32

        # weighted_loss reduction semantics (weight=None)
        if self.reduction == "none":
            red = loss
        elif self.reduction == "sum":
            red = jnp.sum(loss)
        else:  # 'mean'
            if avg_factor is None:
                red = jnp.mean(loss)
            else:
                red = jnp.sum(loss) / avg_factor
        return self.loss_weight * red


def _reference_loss(pred, target, reduction="mean"):
    n = pred.shape[0]
    p = pred.reshape(n, -1).astype(jnp.float32)
    t = target.reshape(n, -1).astype(jnp.float32)
    a = jnp.sum(p * t, 1)
    b = jnp.sum(p * p, 1) + 0.001
    c = jnp.sum(t * t, 1) + 0.001
    loss = 1.0 - 2.0 * a / (b + c)
    if reduction == "none":
        return loss
    if reduction == "sum":
        return jnp.sum(loss)
    return jnp.mean(loss)


if __name__ == "__main__":
    key = jax.random.PRNGKey(0)
    k1, k2, k3, k4, k5, k6 = jax.random.split(key, 6)

    # Test 1: module-consistent shapes (N, C, H, W) = (2, 4, 16, 16), D = 1024
    # (D divisible by the tile -> unmasked path).
    N, C, H, W = 2, 4, 16, 16
    pred = jax.random.uniform(k1, (N, C, H, W), dtype=jnp.float32)              # sigmoid-like probs
    target = (jax.random.uniform(k2, (N, C, H, W)) > 0.5).astype(jnp.float32)   # binary mask

    loss_mod = DiceLoss(reduction="mean", loss_weight=1.0)
    out = jax.block_until_ready(loss_mod(pred, target))
    ref = _reference_loss(pred, target, "mean")
    assert jnp.allclose(out, ref, atol=1e-5, rtol=1e-5), (out, ref)

    # Test 2: ragged D (300, not a multiple of 128), ragged last N block, bf16 pred.
    N2, C2, H2, W2 = 10, 3, 10, 10
    pred2 = jax.random.uniform(k3, (N2, C2, H2, W2), dtype=jnp.float32).astype(jnp.bfloat16)
    target2 = (jax.random.uniform(k4, (N2, C2, H2, W2)) > 0.5).astype(jnp.float32)

    loss_mod2 = DiceLoss(reduction="none")
    out2 = jax.block_until_ready(loss_mod2(pred2, target2))
    ref2 = _reference_loss(pred2, target2, "none")
    assert jnp.allclose(out2, ref2, atol=1e-5, rtol=1e-4), (out2, ref2)

    # Test 3: n >= 16 (multiple N blocks + megacore tn cap + row-group fori path),
    # ragged D (4800 = 37*128 + 64), sum reduction.
    N3, C3, H3, W3 = 32, 3, 40, 40
    pred3 = jax.random.uniform(k5, (N3, C3, H3, W3), dtype=jnp.float32)
    target3 = (jax.random.uniform(k6, (N3, C3, H3, W3)) > 0.5).astype(jnp.float32)

    loss_mod3 = DiceLoss(reduction="sum", loss_weight=0.5)
    out3 = jax.block_until_ready(loss_mod3(pred3, target3))
    ref3 = 0.5 * _reference_loss(pred3, target3, "sum")
    assert jnp.allclose(out3, ref3, atol=1e-4, rtol=1e-5), (out3, ref3)

    print("KERNEL_OK")
</pallas_src>

<mosaic_0001>
module attributes {stable_mosaic.version = 11 : i64} {
  func.func @_dice_kernel(%arg0: i32, %arg1: i32, %arg2: memref<2x1024xf32, #tpu.memory_space<vmem>>, %arg3: memref<2x1024xf32, #tpu.memory_space<vmem>>, %arg4: memref<2x1xf32, #tpu.memory_space<vmem>>, %arg5: memref<2x128xf32, #tpu.memory_space<vmem>>, %arg6: memref<2x128xf32, #tpu.memory_space<vmem>>) attributes {dimension_semantics = [#tpu.dimension_semantics<parallel>, #tpu.dimension_semantics<arbitrary>], iteration_bounds = array<i64: 1, 1>, scalar_prefetch = 0 : i64, scratch_operands = 2 : i64, tpu.core_type = #tpu.core_type<tc>, window_params = [{transform_indices = @transform_0, window_bounds = array<i64: 2, 1024>}, {transform_indices = @transform_1, window_bounds = array<i64: 2, 1024>}, {transform_indices = @transform_2, window_bounds = array<i64: 2, 1>}]} {
    %c0_i32 = arith.constant 0 : i32
    %0 = arith.cmpi eq, %arg1, %c0_i32 : i32
    %1 = arith.extui %0 : i1 to i32
    %c0_i32_0 = arith.constant 0 : i32
    %2 = arith.cmpi ne, %1, %c0_i32_0 : i32
    scf.if %2 {
      %cst = arith.constant 0.000000e+00 : f32
      %74 = vector.broadcast %cst : f32 to vector<2x128xf32>
      %c0_35 = arith.constant 0 : index
      %c0_36 = arith.constant 0 : index
      %75 = vector.load %arg5[%c0_35, %c0_36] : memref<2x128xf32, #tpu.memory_space<vmem>>, vector<2x128xf32>
      tpu.vector_store %arg5[%c0_35, %c0_36], %74 {strides = array<i32>} : memref<2x128xf32, #tpu.memory_space<vmem>>, vector<2x128xf32>,
      %cst_37 = arith.constant 0.000000e+00 : f32
      %76 = vector.broadcast %cst_37 : f32 to vector<2x128xf32>
      %c0_38 = arith.constant 0 : index
      %c0_39 = arith.constant 0 : index
      %77 = vector.load %arg6[%c0_38, %c0_39] : memref<2x128xf32, #tpu.memory_space<vmem>>, vector<2x128xf32>
      tpu.vector_store %arg6[%c0_38, %c0_39], %76 {strides = array<i32>} : memref<2x128xf32, #tpu.memory_space<vmem>>, vector<2x128xf32>,
    } else {
    }
    %c0 = arith.constant 0 : index
    %c0_1 = arith.constant 0 : index
    %3 = vector.load %arg5[%c0, %c0_1] : memref<2x128xf32, #tpu.memory_space<vmem>>, vector<2x128xf32>
    %c0_2 = arith.constant 0 : index
    %c0_3 = arith.constant 0 : index
    %4 = vector.load %arg6[%c0_2, %c0_3] : memref<2x128xf32, #tpu.memory_space<vmem>>, vector<2x128xf32>
    %c0_4 = arith.constant 0 : index
    %c0_5 = arith.constant 0 : index
    %5 = vector.load %arg2[%c0_4, %c0_5] : memref<2x1024xf32, #tpu.memory_space<vmem>>, vector<2x128xf32>
    %c0_6 = arith.constant 0 : index
    %c0_7 = arith.constant 0 : index
    %6 = vector.load %arg3[%c0_6, %c0_7] : memref<2x1024xf32, #tpu.memory_space<vmem>>, vector<2x128xf32>
    %7 = arith.mulf %5, %6 : vector<2x128xf32>
    %8 = arith.addf %3, %7 : vector<2x128xf32>
    %9 = arith.mulf %5, %5 : vector<2x128xf32>
    %10 = arith.addf %4, %9 : vector<2x128xf32>
    %11 = arith.mulf %6, %6 : vector<2x128xf32>
    %12 = arith.addf %10, %11 : vector<2x128xf32>
    %c0_8 = arith.constant 0 : index
    %c128 = arith.constant 128 : index
    %13 = vector.load %arg2[%c0_8, %c128] : memref<2x1024xf32, #tpu.memory_space<vmem>>, vector<2x128xf32>
    %c0_9 = arith.constant 0 : index
    %c128_10 = arith.constant 128 : index
    %14 = vector.load %arg3[%c0_9, %c128_10] : memref<2x1024xf32, #tpu.memory_space<vmem>>, vector<2x128xf32>
    %15 = arith.mulf %13, %14 : vector<2x128xf32>
    %16 = arith.addf %8, %15 : vector<2x128xf32>
    %17 = arith.mulf %13, %13 : vector<2x128xf32>
    %18 = arith.addf %12, %17 : vector<2x128xf32>
    %19 = arith.mulf %14, %14 : vector<2x128xf32>
    %20 = arith.addf %18, %19 : vector<2x128xf32>
    %c0_11 = arith.constant 0 : index
    %c256 = arith.constant 256 : index
    %21 = vector.load %arg2[%c0_11, %c256] : memref<2x1024xf32, #tpu.memory_space<vmem>>, vector<2x128xf32>
    %c0_12 = arith.constant 0 : index
    %c256_13 = arith.constant 256 : index
    %22 = vector.load %arg3[%c0_12, %c256_13] : memref<2x1024xf32, #tpu.memory_space<vmem>>, vector<2x128xf32>
    %23 = arith.mulf %21, %22 : vector<2x128xf32>
    %24 = arith.addf %16, %23 : vector<2x128xf32>
    %25 = arith.mulf %21, %21 : vector<2x128xf32>
    %26 = arith.addf %20, %25 : vector<2x128xf32>
    %27 = arith.mulf %22, %22 : vector<2x128xf32>
    %28 = arith.addf %26, %27 : vector<2x128xf32>
    %c0_14 = arith.constant 0 : index
    %c384 = arith.constant 384 : index
    %29 = vector.load %arg2[%c0_14, %c384] : memref<2x1024xf32, #tpu.memory_space<vmem>>, vector<2x128xf32>
    %c0_15 = arith.constant 0 : index
    %c384_16 = arith.constant 384 : index
    %30 = vector.load %arg3[%c0_15, %c384_16] : memref<2x1024xf32, #tpu.memory_space<vmem>>, vector<2x128xf32>
    %31 = arith.mulf %29, %30 : vector<2x128xf32>
    %32 = arith.addf %24, %31 : vector<2x128xf32>
    %33 = arith.mulf %29, %29 : vector<2x128xf32>
    %34 = arith.addf %28, %33 : vector<2x128xf32>
    %35 = arith.mulf %30, %30 : vector<2x128xf32>
    %36 = arith.addf %34, %35 : vector<2x128xf32>
    %c0_17 = arith.constant 0 : index
    %c512 = arith.constant 512 : index
    %37 = vector.load %arg2[%c0_17, %c512] : memref<2x1024xf32, #tpu.memory_space<vmem>>, vector<2x128xf32>
    %c0_18 = arith.constant 0 : index
    %c512_19 = arith.constant 512 : index
    %38 = vector.load %arg3[%c0_18, %c512_19] : memref<2x1024xf32, #tpu.memory_space<vmem>>, vector<2x128xf32>
    %39 = arith.mulf %37, %38 : vector<2x128xf32>
    %40 = arith.addf %32, %39 : vector<2x128xf32>
    %41 = arith.mulf %37, %37 : vector<2x128xf32>
    %42 = arith.addf %36, %41 : vector<2x128xf32>
    %43 = arith.mulf %38, %38 : vector<2x128xf32>
    %44 = arith.addf %42, %43 : vector<2x128xf32>
    %c0_20 = arith.constant 0 : index
    %c640 = arith.constant 640 : index
    %45 = vector.load %arg2[%c0_20, %c640] : memref<2x1024xf32, #tpu.memory_space<vmem>>, vector<2x128xf32>
    %c0_21 = arith.constant 0 : index
    %c640_22 = arith.constant 640 : index
    %46 = vector.load %arg3[%c0_21, %c640_22] : memref<2x1024xf32, #tpu.memory_space<vmem>>, vector<2x128xf32>
    %47 = arith.mulf %45, %46 : vector<2x128xf32>
    %48 = arith.addf %40, %47 : vector<2x128xf32>
    %49 = arith.mulf %45, %45 : vector<2x128xf32>
    %50 = arith.addf %44, %49 : vector<2x128xf32>
    %51 = arith.mulf %46, %46 : vector<2x128xf32>
    %52 = arith.addf %50, %51 : vector<2x128xf32>
    %c0_23 = arith.constant 0 : index
    %c768 = arith.constant 768 : index
    %53 = vector.load %arg2[%c0_23, %c768] : memref<2x1024xf32, #tpu.memory_space<vmem>>, vector<2x128xf32>
    %c0_24 = arith.constant 0 : index
    %c768_25 = arith.constant 768 : index
    %54 = vector.load %arg3[%c0_24, %c768_25] : memref<2x1024xf32, #tpu.memory_space<vmem>>, vector<2x128xf32>
    %55 = arith.mulf %53, %54 : vector<2x128xf32>
    %56 = arith.addf %48, %55 : vector<2x128xf32>
    %57 = arith.mulf %53, %53 : vector<2x128xf32>
    %58 = arith.addf %52, %57 : vector<2x128xf32>
    %59 = arith.mulf %54, %54 : vector<2x128xf32>
    %60 = arith.addf %58, %59 : vector<2x128xf32>
    %c0_26 = arith.constant 0 : index
    %c896 = arith.constant 896 : index
    %61 = vector.load %arg2[%c0_26, %c896] : memref<2x1024xf32, #tpu.memory_space<vmem>>, vector<2x128xf32>
    %c0_27 = arith.constant 0 : index
    %c896_28 = arith.constant 896 : index
    %62 = vector.load %arg3[%c0_27, %c896_28] : memref<2x1024xf32, #tpu.memory_space<vmem>>, vector<2x128xf32>
    %63 = arith.mulf %61, %62 : vector<2x128xf32>
    %64 = arith.addf %56, %63 : vector<2x128xf32>
    %65 = arith.mulf %61, %61 : vector<2x128xf32>
    %66 = arith.addf %60, %65 : vector<2x128xf32>
    %67 = arith.mulf %62, %62 : vector<2x128xf32>
    %68 = arith.addf %66, %67 : vector<2x128xf32>
    %c0_29 = arith.constant 0 : index
    %c0_30 = arith.constant 0 : index
    %69 = vector.load %arg5[%c0_29, %c0_30] : memref<2x128xf32, #tpu.memory_space<vmem>>, vector<2x128xf32>
    tpu.vector_store %arg5[%c0_29, %c0_30], %64 {strides = array<i32>} : memref<2x128xf32, #tpu.memory_space<vmem>>, vector<2x128xf32>,
    %c0_31 = arith.constant 0 : index
    %c0_32 = arith.constant 0 : index
    %70 = vector.load %arg6[%c0_31, %c0_32] : memref<2x128xf32, #tpu.memory_space<vmem>>, vector<2x128xf32>
    tpu.vector_store %arg6[%c0_31, %c0_32], %68 {strides = array<i32>} : memref<2x128xf32, #tpu.memory_space<vmem>>, vector<2x128xf32>,
    %c0_i32_33 = arith.constant 0 : i32
    %71 = arith.cmpi eq, %arg1, %c0_i32_33 : i32
    %72 = arith.extui %71 : i1 to i32
    %c0_i32_34 = arith.constant 0 : i32
    %73 = arith.cmpi ne, %72, %c0_i32_34 : i32
    scf.if %73 {
      %c0_35 = arith.constant 0 : index
      %c0_36 = arith.constant 0 : index
      %74 = vector.load %arg5[%c0_35, %c0_36] : memref<2x128xf32, #tpu.memory_space<vmem>>, vector<2x128xf32>
      %cst = arith.constant dense<0.000000e+00> : vector<2xf32>
      %75 = vector.multi_reduction <add>, %74, %cst [1] : vector<2x128xf32> to vector<2xf32>
      %76 = vector.shape_cast %75 : vector<2xf32> to vector<2x1xf32>
      %c0_37 = arith.constant 0 : index
      %c0_38 = arith.constant 0 : index
      %77 = vector.load %arg6[%c0_37, %c0_38] : memref<2x128xf32, #tpu.memory_space<vmem>>, vector<2x128xf32>
      %cst_39 = arith.constant dense<0.000000e+00> : vector<2xf32>
      %78 = vector.multi_reduction <add>, %77, %cst_39 [1] : vector<2x128xf32> to vector<2xf32>
      %79 = vector.shape_cast %78 : vector<2xf32> to vector<2x1xf32>
      %cst_40 = arith.constant 2.000000e-03 : f32
      %80 = vector.broadcast %cst_40 : f32 to vector<2x1xf32>
      %81 = arith.addf %79, %80 : vector<2x1xf32>
      %cst_41 = arith.constant 2.000000e+00 : f32
      %82 = vector.broadcast %cst_41 : f32 to vector<2x1xf32>
      %83 = arith.mulf %82, %76 : vector<2x1xf32>
      %84 = arith.divf %83, %81 : vector<2x1xf32>
      %cst_42 = arith.constant 1.000000e+00 : f32
      %85 = vector.broadcast %cst_42 : f32 to vector<2x1xf32>
      %86 = arith.subf %85, %84 : vector<2x1xf32>
      %c0_43 = arith.constant 0 : index
      %c0_44 = arith.constant 0 : index
      %87 = vector.load %arg4[%c0_43, %c0_44] : memref<2x1xf32, #tpu.memory_space<vmem>>, vector<2x1xf32>
      tpu.vector_store %arg4[%c0_43, %c0_44], %86 {strides = array<i32>} : memref<2x1xf32, #tpu.memory_space<vmem>>, vector<2x1xf32>,
    } else {
    }
    return
  }
  func.func @transform_0(%arg0: i32, %arg1: i32) -> (i32, i32) {
    %c0_i32 = arith.constant 0 : i32
    return %arg0, %arg1 : i32, i32
  }
  func.func @transform_1(%arg0: i32, %arg1: i32) -> (i32, i32) {
    %c0_i32 = arith.constant 0 : i32
    return %arg0, %arg1 : i32, i32
  }
  func.func @transform_2(%arg0: i32, %arg1: i32) -> (i32, i32) {
    %c0_i32 = arith.constant 0 : i32
    %c0_i32_0 = arith.constant 0 : i32
    return %arg0, %c0_i32 : i32, i32
  }
}

</mosaic_0001>

<bundles_post_ra>
// kernel: _dice_loss_per_sample.1
= control target key start
LH: loop header
LB: loop body
LE: loop exit
PB: predicated region body
PF: predicated region fallthrough
CT: control target
= control target key end

     0   :  { %7 = vsyncpa [#allocation5], 0  ;;  %s232_s0 = inlined_call_operand.hbm [shape: f32[2,1024], index: 0, kind: input, shape index: {}]   ;;  %s233_s1 = inlined_call_operand.hbm [shape: f32[2,1024], index: 1, kind: input, shape index: {}]   ;;  %s234_s2 = inlined_call_operand.vmem [shape: f32[2,1], index: 2, kind: output, shape index: {}]  }
   0x1   :  { %8 = vsyncpa [#allocation7], 0  ;;  %s187_s9 = smov [#allocation4]   ;;  %s188_s11 = smov [#allocation6]  }
   0x2   :  { %s15_s10 = sshll.u32 %s187_s9, 4  ;;  %s25_s12 = sshll.u32 %s188_s11, 4  ;;  %s16_s10 = int_to_ptr.vmem [resolvable:$true] %s15_s10  ;;  %s26_s12 = int_to_ptr.vmem [resolvable:$true] %s25_s12 }
   0x3   :  { %s139_s15 = scalar_lea.hbm %s232_s0, 256 }
   0x4   :  { %p140_p0 = scmp.ne.s32.totalorder %s232_s0, %s139_s15  ;;  %p143_p1 = scmp.lt.u32.totalorder %s139_s15, %s232_s0 }
   0x6   :  { %p145_p2 = pnand %p143_p1, %p140_p0 }
   0x8   :  { %148 = shalt.err (!%p145_p2)
}
   0x9   :  { %s149_s20 = scalar_lea.vmem %s16_s10, 256  ;;  %p154_p4 = scmp.lt.s32.totalorder %s16_s10, %s16_s10 }
   0xa   :  { %p150_p3 = scmp.ne.s32.totalorder %s16_s10, %s149_s20  ;;  %p155_p5 = scmp.lt.s32.totalorder %s149_s20, %s149_s20 }
   0xc   :  { %p156_p6 = por %p155_p5, %p154_p4 }
   0xe   :  { %p157_p7 = pnand %p156_p6, %p150_p3 }
  0x10   :  { %160 = shalt.err (!%p157_p7)
}
  0x11   :  { %18 = dma.hbm_to_vmem [thread:$0]  %s232_s0, 256, %s16_s10, [#allocation5]  }
  0x12   :  { %s161_s25 = scalar_lea.hbm %s233_s1, 256 }
  0x13   :  { %p162_p8 = scmp.ne.s32.totalorder %s233_s1, %s161_s25  ;;  %p165_p9 = scmp.lt.u32.totalorder %s161_s25, %s233_s1 }
  0x15   :  { %p167_p10 = pnand %p165_p9, %p162_p8 }
  0x17   :  { %170 = shalt.err (!%p167_p10)
}
  0x18   :  { %s171_s30 = scalar_lea.vmem %s26_s12, 256  ;;  %p176_p12 = scmp.lt.s32.totalorder %s26_s12, %s26_s12 }
  0x19   :  { %p172_p11 = scmp.ne.s32.totalorder %s26_s12, %s171_s30  ;;  %p177_p13 = scmp.lt.s32.totalorder %s171_s30, %s171_s30 }
  0x1b   :  { %p178_p0 = por %p177_p13, %p176_p12 }
  0x1d   :  { %p179_p1 = pnand %p178_p0, %p172_p11 }
  0x1f   :  { %182 = shalt.err (!%p179_p1)
}
  0x20   :  { %28 = dma.hbm_to_vmem [thread:$0]  %s233_s1, 256, %s26_s12, [#allocation7]  }
  0x21   :  { %183 = dma.done.wait [#allocation5], 256  }
  0x22   :  { %184 = vsyncadd [#allocation5], 4294967040 }
  0x23   :  { %185 = dma.done.wait [#allocation7], 256  }
  0x24   :  { %186 = vsyncadd [#allocation7], 4294967040  ;;  %v189_v0 = vmov 0.0   ;;  %v43_v1 = vld [vmem:[#allocation4] sm:$0x3]  ;;  %vm113_vm0 = vcmask 1041408  }
  0x25   :  { %40 = vst [vmem:[#allocation3] sm:$0x3] %v189_v0  ;;  %39 = vst [vmem:[#allocation2] sm:$0x3] %v189_v0  ;;  %v44_v2 = vld [vmem:[#allocation6] sm:$0x3]  ;;  %v47_v5 = vmul.f32 %v43_v1, %v43_v1 }
  0x26   :  { %v51_v3 = vld [vmem:[#allocation4 + $0x2] sm:$0x3]  ;;  %v49_v6 = vmul.f32 %v44_v2, %v44_v2  ;;  %v52_v7 = vld [vmem:[#allocation6 + $0x2] sm:$0x3]  ;;  %v45_v8 = vmul.f32 %v44_v2, %v43_v1  ;;  %v59_v11 = vld [vmem:[#allocation4 + $0x4] sm:$0x3] }
  0x27   :  { %v55_v10 = vmul.f32 %v51_v3, %v51_v3  ;;  %v53_v12 = vmul.f32 %v52_v7, %v51_v3  ;;  %v57_v14 = vmul.f32 %v52_v7, %v52_v7  ;;  %v60_v15 = vld [vmem:[#allocation6 + $0x4] sm:$0x3]  ;;  %v63_v20 = vmul.f32 %v59_v11, %v59_v11  ;;  %v67_v21 = vld [vmem:[#allocation4 + $0x6] sm:$0x3]  ;;  %v68_v22 = vld [vmem:[#allocation6 + $0x6] sm:$0x3] }
  0x28   :  { %v61_v18 = vmul.f32 %v60_v15, %v59_v11  ;;  %v69_v24 = vmul.f32 %v68_v22, %v67_v21  ;;  %v65_v26 = vmul.f32 %v60_v15, %v60_v15  ;;  %v75_v27 = vld [vmem:[#allocation4 + $0x8] sm:$0x3]  ;;  %v76_v28 = vld [vmem:[#allocation6 + $0x8] sm:$0x3]  ;;  %v71_v32 = vmul.f32 %v67_v21, %v67_v21  ;;  %v83_v33 = vld [vmem:[#allocation4 + $0xa] sm:$0x3] }
  0x29   :  { %v77_v30 = vmul.f32 %v76_v28, %v75_v27  ;;  %v84_v34 = vld [vmem:[#allocation6 + $0xa] sm:$0x3]  ;;  %v73_v38 = vmul.f32 %v68_v22, %v68_v22  ;;  %v91_v39 = vld [vmem:[#allocation4 + $0xc] sm:$0x3]  ;;  %v92_v40 = vld [vmem:[#allocation6 + $0xc] sm:$0x3]  ;;  %v79_v44 = vmul.f32 %v75_v27, %v75_v27  ;;  %v81_v50 = vmul.f32 %v76_v28, %v76_v28 }
  0x2a   :  { %v85_v36 = vmul.f32 %v84_v34, %v83_v33  ;;  %v93_v42 = vmul.f32 %v92_v40, %v91_v39  ;;  %v99_v45 = vld [vmem:[#allocation4 + $0xe] sm:$0x3]  ;;  %v100_v46 = vld [vmem:[#allocation6 + $0xe] sm:$0x3]  ;;  %v87_v53 = vmul.f32 %v83_v33, %v83_v33  ;;  %v89_v56 = vmul.f32 %v84_v34, %v84_v34 }
  0x2b   :  { %v101_v48 = vmul.f32 %v100_v46, %v99_v45  ;;  %v95_v58 = vmul.f32 %v91_v39, %v91_v39  ;;  %v97_v60 = vmul.f32 %v92_v40, %v92_v40  ;;  %v103_v62 = vmul.f32 %v99_v45, %v99_v45 }
  0x2c   :  { %v42_v4 = vld [vmem:[#allocation3] sm:$0x3]  ;;  %v41_v16 = vld [vmem:[#allocation2] sm:$0x3]  ;;  %v105_v0 = vmul.f32 %v100_v46, %v100_v46  ;;  %vm126_vm1 = vcmask 1024  }
  0x2d   :  { %v48_v9 = vadd.f32 %v47_v5, %v42_v4  ;;  %v46_v17 = vadd.f32 %v45_v8, %v41_v16 }
  0x2f   :  { %v50_v13 = vadd.f32 %v49_v6, %v48_v9  ;;  %v54_v23 = vadd.f32 %v53_v12, %v46_v17 }
  0x31   :  { %v56_v19 = vadd.f32 %v55_v10, %v50_v13  ;;  %v62_v29 = vadd.f32 %v61_v18, %v54_v23 }
  0x33   :  { %v58_v25 = vadd.f32 %v57_v14, %v56_v19  ;;  %v70_v35 = vadd.f32 %v69_v24, %v62_v29 }
  0x35   :  { %v64_v31 = vadd.f32 %v63_v20, %v58_v25  ;;  %v78_v41 = vadd.f32 %v77_v30, %v70_v35 }
  0x37   :  { %v66_v37 = vadd.f32 %v65_v26, %v64_v31  ;;  %v86_v47 = vadd.f32 %v85_v36, %v78_v41 }
  0x39   :  { %v72_v43 = vadd.f32 %v71_v32, %v66_v37  ;;  %v94_v51 = vadd.f32 %v93_v42, %v86_v47 }
  0x3b   :  { %v74_v49 = vadd.f32 %v73_v38, %v72_v43  ;;  %v102_v54 = vadd.f32 %v101_v48, %v94_v51 }
  0x3d   :  { %v80_v52 = vadd.f32 %v79_v44, %v74_v49  ;;  %107 = vst [vmem:[#allocation2] sm:$0x3] %v102_v54 }
  0x3f   :  { %v82_v55 = vadd.f32 %v81_v50, %v80_v52 }
  0x41   :  { %v88_v57 = vadd.f32 %v87_v53, %v82_v55 }
  0x43   :  { %v90_v59 = vadd.f32 %v89_v56, %v88_v57 }
  0x44   :  { %v112_v4 = vld [vmem:[#allocation2] sm:$0x3] }
  0x45   :  { %v96_v61 = vadd.f32 %v95_v58, %v90_v59  ;;  %v114_v6 = vsel %vm113_vm0, %v112_v4, 0.0 }
  0x47   :  { %v98_v63 = vadd.f32 %v97_v60, %v96_v61 }
  0x49   :  { %v104_v1 = vadd.f32 %v103_v62, %v98_v63 }
  0x4b   :  { %v106_v2 = vadd.f32 %v105_v0, %v104_v1 }
  0x4d   :  { %108 = vst [vmem:[#allocation3] sm:$0x3] %v106_v2 }
  0x54   :  { %v117_v3 = vld [vmem:[#allocation3] sm:$0x3] }
  0x55   :  { %v118_v5 = vsel %vm113_vm0, %v117_v3, 0.0 }
  0x56   :  { %119 = vadd.xlane.f32.xlu0 %v118_v5 }
  0x5a   :  { %115 = vadd.xlane.f32.xlu0 %v114_v6 }
  0xe3   :  { %v120_v7 = vpop.xlane.xlu0 %119 }
  0xe4   :  { %v121_v8 = vadd.f32 0.002, %v120_v7 }
  0xe6   :  { %137 = vrcp.f32 %v121_v8 }
  0xe7   :  { %v116_v9 = vpop.xlane.xlu0 %115 }
  0xe8   :  { %v122_v10 = vmul.f32 2.0, %v116_v9 }
  0xf0   :  { %v138_v11 = vpop.eup %137 }
  0xf1   :  { %v124_v12 = vmul.f32 %v138_v11, %v122_v10 }
  0xf3   :  { %v125_v13 = vsub.f32 1.0, %v124_v12 }
  0xf5   :  { %127 = vst.msk [vmem:[%s234_s2] sm:$0x3] %vm126_vm1, %v125_v13 }
  0xf6   :  { %132 = vsyncpa [#allocation5], 1 }
  0xf7   :  { %133 = vsyncpa [#allocation7], 1 }

</bundles_post_ra>
